<compile_context>
chip_gen: v7x
topology: tpu7x:2x2x1
jax: 0.10.0
libtpu: 0.0.40
codegen_flags: <defaults>
</compile_context>

<pallas_src>
import jax
import jax.numpy as jnp
from jax import lax
from jax.experimental import pallas as pl
from jax.experimental.pallas import tpu as pltpu


def _round_up(x: int, m: int) -> int:
    return ((x + m - 1) // m) * m


def _linear_head_kernel(x_ref, w_ref, b_ref, o_ref):
    # x_ref: (TILE_B, H) VMEM, w_ref: (C, H) VMEM, b_ref: (C,) SMEM, o_ref: (C, TILE_B) VMEM
    # Contract H against the PyTorch-layout weight on the MXU, producing the result
    # transposed so the store is lane-dense (last dim = TILE_B, a multiple of 128).
    acc = lax.dot_general(
        w_ref[...], x_ref[...],
        dimension_numbers=(((1,), (1,)), ((), ())),
        preferred_element_type=jnp.float32,
    )  # (C, TILE_B), f32
    # Bias: C scalar adds from SMEM; C is tiny (2 for NSP) -> static unroll,
    # one lane-dense row store per class.
    for c in range(o_ref.shape[0]):
        o_ref[c:c + 1, :] = (acc[c:c + 1, :] + b_ref[c]).astype(o_ref.dtype)


def next_sentence_pred(x, weight, bias, *, tile_b=None):
    """x: (B, H), weight: (C, H) (PyTorch nn.Linear layout), bias: (C,) -> (B, C)."""
    B, H = x.shape
    C, H2 = weight.shape
    assert H == H2 and bias.shape == (C,)

    x_item = jnp.dtype(x.dtype).itemsize
    w_item = jnp.dtype(weight.dtype).itemsize

    # Per-generation VMEM budget (leave headroom for compiler internal scratch).
    try:
        vmem_cap = pltpu.get_tpu_info().vmem_capacity_bytes
    except Exception:
        vmem_cap = 64 * 1024 * 1024            # conservative fallback
    if vmem_cap <= 64 * 1024 * 1024:           # v7x: 64 MiB physical per TensorCore
        usable = 48 * 1024 * 1024
    else:                                      # v5e / v6e: 128 MiB physical
        usable = 100 * 1024 * 1024

    def footprint(tb):
        return (2 * tb * H * x_item            # double-buffered streaming X tiles
                + 2 * C * tb * x_item          # double-buffered (C, tile_b) output blocks
                + 2 * C * H * w_item           # small weight (double-buffered by spec)
                + (4 << 20))                   # headroom for compiler scratch

    if tile_b is None:
        # Big tiles amortize the ~0.35 us/step overhead; the VMEM loop below shrinks them.
        tile_b = 4096 if H * x_item <= (8 << 10) else 2048
        if B >= 256:
            # Keep >=2 tiles so both v7x TensorCores get work on the "parallel" axis.
            tile_b = min(tile_b, _round_up(pl.cdiv(B, 2), 128))
    tile_b = max(128, _round_up(min(tile_b, _round_up(B, 128)), 128))
    while tile_b > 128 and footprint(tile_b) > usable:
        tile_b -= 128

    grid = (pl.cdiv(B, tile_b),)
    vmem_limit = int(min(usable, max(32 * 1024 * 1024, footprint(tile_b))))

    cost = pl.CostEstimate(
        flops=2 * B * H * C,
        transcendentals=0,
        bytes_accessed=(B * H + B * C) * x_item
        + C * H * w_item
        + C * jnp.dtype(bias.dtype).itemsize,
    )

    out_t = pl.pallas_call(
        _linear_head_kernel,
        out_shape=jax.ShapeDtypeStruct((C, B), x.dtype),
        grid_spec=pltpu.PrefetchScalarGridSpec(
            num_scalar_prefetch=0,
            grid=grid,
            in_specs=[
                # Streamed X tiles; ragged final block handled by Pallas masking.
                # TODO(synk): bump to pipeline_mode=pl.Buffered(3) if xprof shows exposed DMA.
                pl.BlockSpec((tile_b, H), lambda i: (i, 0)),
                pl.BlockSpec((C, H), lambda i: (0, 0)),             # small resident weight
                pl.BlockSpec(memory_space=pltpu.MemorySpace.SMEM),  # bias scalars in SMEM
            ],
            out_specs=pl.BlockSpec((C, tile_b), lambda i: (0, i)),  # lane-dense output
        ),
        compiler_params=pltpu.CompilerParams(
            dimension_semantics=("parallel",),   # independent tiles -> v7x megacore sharding
            vmem_limit_bytes=vmem_limit,
        ),
        cost_estimate=cost,
    )(x, weight, bias)
    # Tiny (C, B) -> (B, C) transpose in the wrapper (negligible vs the (B, H) HBM stream).
    return out_t.T


if __name__ == "__main__":
    key = jax.random.PRNGKey(0)
    kx, kw, kb = jax.random.split(key, 3)

    # Small shapes that exercise batch tiling + the ragged (non-multiple) final block:
    #  - explicit tile_b=128 -> grid=(5,), last block has only 8 live rows
    #  - auto tile_b -> 384-row tiles, grid=(2,), last block has 136 live rows
    B, H, C = 520, 128, 2
    x = jax.random.normal(kx, (B, H), dtype=jnp.float32)

    bound = 1.0 / (H ** 0.5)   # mimic nn.Linear's uniform(-1/sqrt(H), 1/sqrt(H)) init
    weight = jax.random.uniform(kw, (C, H), dtype=jnp.float32, minval=-bound, maxval=bound)
    bias = jax.random.uniform(kb, (C,), dtype=jnp.float32, minval=-bound, maxval=bound)

    out = jax.block_until_ready(next_sentence_pred(x, weight, bias, tile_b=128))
    out_auto = jax.block_until_ready(next_sentence_pred(x, weight, bias))

    # Reference check against plain JAX (same semantics as nn.Linear forward)
    ref = jnp.dot(x, weight.T, precision=lax.Precision.HIGHEST) + bias
    assert out.shape == (B, C) and out_auto.shape == (B, C)
    assert jnp.allclose(out, ref, atol=2e-4, rtol=2e-4), "mismatch vs reference (tiled)"
    assert jnp.allclose(out_auto, ref, atol=2e-4, rtol=2e-4), "mismatch vs reference (auto)"

    print("KERNEL_OK")
</pallas_src>

<mosaic_0001>
module attributes {stable_mosaic.version = 11 : i64} {
  func.func @_linear_head_kernel(%arg0: i32, %arg1: memref<128x128xf32, #tpu.memory_space<vmem>>, %arg2: memref<2x128xf32, #tpu.memory_space<vmem>>, %arg3: memref<2xf32, #tpu.memory_space<smem>>, %arg4: memref<2x128xf32, #tpu.memory_space<vmem>>) attributes {dimension_semantics = [#tpu.dimension_semantics<parallel>], iteration_bounds = array<i64: 5>, scalar_prefetch = 0 : i64, scratch_operands = 0 : i64, tpu.core_type = #tpu.core_type<tc>, window_params = [{transform_indices = @transform_0, window_bounds = array<i64: 128, 128>}, {pipeline_mode = #tpu.pipeline_mode<synchronous>, transform_indices = @transform_1, window_bounds = array<i64: 2, 128>}, {transform_indices = @transform_2, window_bounds = array<i64: 2>}, {transform_indices = @transform_3, window_bounds = array<i64: 2, 128>}]} {
    %c0 = arith.constant 0 : index
    %c0_0 = arith.constant 0 : index
    %0 = vector.load %arg2[%c0, %c0_0] : memref<2x128xf32, #tpu.memory_space<vmem>>, vector<2x128xf32>
    %c0_1 = arith.constant 0 : index
    %c0_2 = arith.constant 0 : index
    %1 = vector.load %arg1[%c0_1, %c0_2] : memref<128x128xf32, #tpu.memory_space<vmem>>, vector<128x128xf32>
    %cst = arith.constant dense<0.000000e+00> : vector<2x128xf32>
    %2 = tpu.matmul %0, %1, %cst {dimension_numbers = #tpu.dot_dimension_numbers<[1], [1], [0], [0], [0, 0, 1, 0], [], []>} : vector<2x128xf32>, vector<128x128xf32>, vector<2x128xf32> -> vector<2x128xf32>
    %3 = vector.extract_strided_slice %2 {offsets = [0, 0], sizes = [1, 128], strides = [1, 1]} : vector<2x128xf32> to vector<1x128xf32>
    %c0_3 = arith.constant 0 : index
    %4 = memref.load %arg3[%c0_3] : memref<2xf32, #tpu.memory_space<smem>>
    %5 = vector.broadcast %4 : f32 to vector<1x128xf32>
    %6 = arith.addf %3, %5 : vector<1x128xf32>
    %c0_4 = arith.constant 0 : index
    %c0_5 = arith.constant 0 : index
    %7 = vector.load %arg4[%c0_4, %c0_5] : memref<2x128xf32, #tpu.memory_space<vmem>>, vector<1x128xf32>
    tpu.vector_store %arg4[%c0_4, %c0_5], %6 {strides = array<i32>} : memref<2x128xf32, #tpu.memory_space<vmem>>, vector<1x128xf32>,
    %8 = vector.extract_strided_slice %2 {offsets = [1, 0], sizes = [1, 128], strides = [1, 1]} : vector<2x128xf32> to vector<1x128xf32>
    %c1 = arith.constant 1 : index
    %9 = memref.load %arg3[%c1] : memref<2xf32, #tpu.memory_space<smem>>
    %10 = vector.broadcast %9 : f32 to vector<1x128xf32>
    %11 = arith.addf %8, %10 : vector<1x128xf32>
    %c1_6 = arith.constant 1 : index
    %c0_7 = arith.constant 0 : index
    %12 = vector.load %arg4[%c1_6, %c0_7] : memref<2x128xf32, #tpu.memory_space<vmem>>, vector<1x128xf32>
    tpu.vector_store %arg4[%c1_6, %c0_7], %11 {strides = array<i32>} : memref<2x128xf32, #tpu.memory_space<vmem>>, vector<1x128xf32>,
    return
  }
  func.func @transform_0(%arg0: i32) -> (i32, i32) {
    %c0_i32 = arith.constant 0 : i32
    %c0_i32_0 = arith.constant 0 : i32
    return %arg0, %c0_i32 : i32, i32
  }
  func.func @transform_1(%arg0: i32) -> (i32, i32) {
    %c0_i32 = arith.constant 0 : i32
    %c0_i32_0 = arith.constant 0 : i32
    %c0_i32_1 = arith.constant 0 : i32
    return %c0_i32, %c0_i32_0 : i32, i32
  }
  func.func @transform_2(%arg0: i32) -> i32 {
    %c0_i32 = arith.constant 0 : i32
    %c0_i32_0 = arith.constant 0 : i32
    return %c0_i32 : i32
  }
  func.func @transform_3(%arg0: i32) -> (i32, i32) {
    %c0_i32 = arith.constant 0 : i32
    %c0_i32_0 = arith.constant 0 : i32
    return %c0_i32, %arg0 : i32, i32
  }
}

</mosaic_0001>

<bundles_post_ra>
// kernel: tpu_custom_call.1
= control target key start
LH: loop header
LB: loop body
LE: loop exit
PB: predicated region body
PF: predicated region fallthrough
CT: control target
= control target key end

     0   :  { %8 = vsyncpa [#allocation3], 0  ;;  %s901_s0 = inlined_call_operand.hbm [shape: f32[520,128], index: 0, kind: input, shape index: {}]   ;;  %s902_s1 = inlined_call_operand.vmem [shape: f32[2,128], index: 1, kind: input, shape index: {}]   ;;  %s903_s2 = inlined_call_operand.vmem [shape: f32[2], index: 2, kind: input, shape index: {}]   ;;  %s904_s3 = inlined_call_operand.hbm [shape: f32[2,520], index: 3, kind: output, shape index: {}]  }
   0x1   :  { %10 = vsyncpa [#allocation3 + $0x1], 0 }
   0x2   :  { %11 = vsyncpa [#allocation5], 0 }
   0x3   :  { %12 = vsyncpa [#allocation4], 0 }
   0x4   :  { %14 = vsyncpa [#allocation4 + $0x1], 0  ;;  %s701_s12 = smov 0   ;;  %s703_s13 = smov 0  }
   0x5   :  { %s705_s14 = smov 0   ;;  %s707_s15 = smov 0  }
   0x6 LB: > { %s722_s16 = sadd.s32 4294967295, %s671_s15   ;;  %s405_s17 = sadd.s32 4294967294, %s671_s15   ;;  %s671_s15 = sphi %s707_s15, %s918_s15   ;;  %s667_s14 = sphi %s705_s14, %s917_s14   ;;  %s663_s13 = sphi %s703_s13, %s916_s13   ;;  %s659_s12 = sphi %s701_s12, %s915_s12  }
   0x7   : > { %s726_s18 = sadd.s32 1, %s671_s15   ;;  %s27_s19 = sadd.s32 1, %s667_s14 }
   0x8   : > { %s24_s20 = ssub.s32 %s671_s15, %s726_s18  ;;  %p34_p0 = scmp.ne.s32.totalorder %s667_s14, %s663_s13 }
   0x9   : > { %p25_p1 = scmp.eq.s32.totalorder %s24_s20, 0  ;;  %p35_p2 = scmp.eq.s32.totalorder %s671_s15, 0 }
   0xa   : > { %p40_p3 = scmp.ne.s32.totalorder %s663_s13, %s659_s12  ;;  %p41_p4 = scmp.eq.s32.totalorder %s722_s16, 0 }
   0xb   : > { %s738_s21 = scalar_select %p25_p1, %s667_s14, %s27_s19  }
   0xc   : > { %p740_p5 = por %p35_p2, %p34_p0  ;;  %p746_p6 = por %p41_p4, %p40_p3 }
   0xd   : > { %p106_p7 = scmp.eq.s32.totalorder %s722_s16, 4  ;;  %p112_p8 = scmp.eq.s32.totalorder %s405_s17, 4 }
   0xe   : > { %s908_s23 = scalar_select %p746_p6, 1, 0 }
   0xf   : > { %p406_p9 = scmp.ge.s32.totalorder %s671_s15, 1  ;;  %p119_p10 = scmp.lt.s32.totalorder %s671_s15, 6 }
  0x10   : > { %p753_p11 = por %p106_p7, %p34_p0  ;;  %p757_p12 = por %p112_p8, %p40_p3 }
  0x11   : > { %p761_p13 = pnand %p406_p9, %p119_p10  ;;  %s135_s29 = sshll.u32 %s903_s2, 4  ;;  %s136_s29 = int_to_ptr.vmem [resolvable:$true] %s135_s29 }
  0x12   : > { %s909_s24 = scalar_select %p753_p11, 1, 0 }
  0x13   : > { %s910_s25 = scalar_select %p757_p12, 1, 0 }
  0x14   : > { %p509_p1 = pneg %p761_p13  ;;  %s558_s30 = scalar_lea.vmem %s136_s29, 16 }
  0x15   : > { %p559_p2 = scmp.ne.s32.totalorder %s136_s29, %s558_s30  ;;  %p566_p12 = scmp.lt.s32.totalorder %s136_s29, %s136_s29 }
  0x16   : > { %p510_p0 = pnand %p509_p1, %p41_p4  ;;  %p567_p9 = scmp.lt.s32.totalorder %s558_s30, %s558_s30 }
  0x18   : > { %p560_p3 = pneg %p510_p0  ;;  %p568_p10 = por %p567_p9, %p566_p12 }
  0x1a   : > { %p561_p7 = pnand %p560_p3, %p559_p2 }
  0x1c   : > { %p562_p8 = pneg %p561_p7 }
  0x1e   : > { %p569_p11 = pnand %p568_p10, %p562_p8 }
  0x20   : > { %572 = shalt.err (!%p569_p11)
}
  0x21   : > { %s673_s4 = smov [#allocation6]   ;;  %p408_p6 = scmp.ge.s32.totalorder %s671_s15, 5 }
  0x22   : > { %512 = dma.vmem_to_smem (!%p510_p0), %s136_s29, 16, %s673_s4, [#allocation5]  }
  0x23   : > { %142 = sbr.rel (%p408_p6) target bundleno = 77 (0x4d), region = 24 }
  0x2a   : > { %145 = sbr.rel (!%p740_p5) target bundleno = 77 (0x4d), region = 28  ;;  %s146_s5 = sand.u32 (%p740_p5), 1, %s667_s14  }
  0x2b   : > { %s410_s6 = sshll.u32 (%p740_p5), %s671_s15, 4  ;;  %s409_s7 = sshll.u32 (%p740_p5), %s146_s5, 7 }
  0x2c   : > { %s152_s8 = ssub.s32 (%p740_p5), 65, %s410_s6  ;;  %s780_s11 = scalar_lea.sflag (%p740_p5), [#allocation3], %s146_s5 }
  0x2d   : > { %p153_p1 = scmp.lt.s32.totalorder (%p740_p5), %s152_s8, 16  ;;  %s150_s17 = scalar_lea.vmem (%p740_p5), [#allocation2], %s409_s7 }
  0x31   : > { %s920_s8 = smov (!%p153_p1, %s152_s8), 16 }
  0x32   : > { %s777_s9 = sshll.u32 %s920_s8, 7 }
  0x33   : > { %s157_s10 = ssub.s32 2048, %s777_s9 }
  0x34   : > { %158 = vsyncadd %s780_s11, %s157_s10  ;;  %p412_p5 = scmp.ne.s32.totalorder %s777_s9, 0  ;;  %s425_s19 = sshll.u32 %s671_s15, 11 }
  0x35   : > { %s788_s27 = scalar_lea.hbm %s901_s0, %s425_s19  ;;  %s163_s28 = sshll.u32 %s150_s17, 4  ;;  %s790_s28 = int_to_ptr.vmem [resolvable:$true] %s163_s28 }
  0x36   : > { %s573_s29 = scalar_lea.hbm %s788_s27, %s777_s9  ;;  %s577_s5 = scalar_lea.hbm %s901_s0, 8320 }
  0x37   : > { %p574_p6 = scmp.ne.s32.totalorder %s788_s27, %s573_s29  ;;  %p578_p0 = scmp.lt.u32.totalorder %s788_s27, %s901_s0 }
  0x38   : > { %p579_p2 = scmp.lt.u32.totalorder %s577_s5, %s573_s29  ;;  %p581_p7 = scmp.lt.u32.totalorder %s573_s29, %s788_s27 }
  0x39   : > { %p575_p11 = pnand %p574_p6, %p412_p5 }
  0x3a   : > { %p580_p3 = por %p579_p2, %p578_p0 }
  0x3b   : > { %p576_p12 = pneg %p575_p11 }
  0x3c   : > { %p582_p8 = por %p581_p7, %p580_p3 }
  0x3e   : > { %p583_p9 = pnand %p582_p8, %p576_p12 }
  0x40   : > { %586 = shalt.err (!%p583_p9)
}
  0x41   : > { %s587_s8 = scalar_lea.vmem %s790_s28, %s777_s9  ;;  %s674_s10 = smov [#allocation2]  }
  0x42   : > { %p588_p10 = scmp.ne.s32.totalorder %s790_s28, %s587_s8  ;;  %s591_s17 = sshll.u32 %s674_s10, 4  ;;  %s592_s17 = int_to_ptr.vmem [resolvable:$false] %s591_s17 }
  0x43   : > { %s593_s19 = scalar_lea.vmem %s592_s17, 4096  ;;  %p594_p11 = scmp.lt.s32.totalorder %s790_s28, %s592_s17 }
  0x44   : > { %p589_p1 = pnand %p588_p10, %p412_p5  ;;  %p595_p0 = scmp.lt.s32.totalorder %s593_s19, %s587_s8 }
  0x46   : > { %p590_p6 = pneg %p589_p1  ;;  %p596_p2 = por %p595_p0, %p594_p11 }
  0x48   : > { %p597_p3 = pnand %p596_p2, %p590_p6 }
  0x4a   : > { %600 = shalt.err (!%p597_p3)
}
  0x4b   : > { %s675_s20 = smov 128   ;;  %s676_s22 = smov 8  }
  0x4c   : > { %169 = dma.hbm_to_vmem [thread:$0]  (%p412_p5), %s788_s27, %s777_s9, %s790_s28, %s780_s11, %s675_s20, %s675_s20, %s676_s22  }
  0x4d PF: > { %175 = sbr.rel (%p761_p13) target bundleno = 383 (0x17f), region = 32  ;;  %s820_s29 = sand.u32 (!%p761_p13), 1, %s663_s13  }
  0x4e   : > { %s417_s30 = sshll.u32 (!%p761_p13), %s820_s29, 7  ;;  %s178_s4 = scalar_lea.sflag (!%p761_p13), [#allocation3], %s820_s29 }
  0x4f   : > { %s824_s5 = scalar_lea.vmem (!%p761_p13), [#allocation2], %s417_s30  ;;  %p912_p12 = scmp.ne.s32.totalorder (!%p761_p13), %s908_s23, 0 }
  0x54   : > { %646 = dma.done.wait (%p912_p12), %s178_s4, 2048  }
  0x55   : > { %648 = vsyncadd (%p912_p12), %s178_s4, 4294965248 }
  0x56   : > { %650 = dma.done.wait (%p41_p4), [#allocation5], 16  }
  0x57   : > { %652 = vsyncadd (%p41_p4), [#allocation5], 4294967280 }
  0x58   : > { %190 = sfence }
  0x59   : > { %v215_v0 = vld [vmem:[%s824_s5] sm:$0xff]  ;;  %v216_v1 = vld [vmem:[%s824_s5 + $0x8] sm:$0xff]  ;;  %v677_v2 = vmov 0.0|0.0   ;;  %vm678_vm0 = vmmov 0   ;;  %v679_v4 = vmov 0.0   ;;  %v217_v5 = vld [vmem:[%s824_s5 + $0x10] sm:$0xff] }
  0x5a   : > { %478 = vmatprep.subr.bf16.mxu0 %v677_v2  ;;  %v479_v3 = vpack.c.bf16 %v216_v1, %v215_v0  ;;  %475 = vmatprep.mubr.msk.f32.mxu0 %vm678_vm0, %v679_v4  ;;  %v218_v6 = vld [vmem:[%s824_s5 + $0x18] sm:$0xff]  ;;  %v219_v8 = vld [vmem:[%s824_s5 + $0x20] sm:$0xff]  ;;  %v220_v9 = vld [vmem:[%s824_s5 + $0x28] sm:$0xff]  ;;  %s301_s9 = sld [smem:[#allocation6]]  ;;  %s420_s11 = sld [smem:[#allocation6 + $0x1]] }
  0x5b   : > { %v482_v7 = vpack.c.bf16 %v218_v6, %v217_v5  ;;  %v485_v10 = vpack.c.bf16 %v220_v9, %v219_v8  ;;  %v221_v11 = vld [vmem:[%s824_s5 + $0x30] sm:$0xff]  ;;  %v222_v12 = vld [vmem:[%s824_s5 + $0x38] sm:$0xff]  ;;  %v223_v14 = vld [vmem:[%s824_s5 + $0x40] sm:$0xff]  ;;  %s419_s27 = sshll.u32 %s820_s29, 1  ;;  %s422_s28 = sshll.u32 %s722_s16, 5 }
  0x5c   : > { %480 = vmatpush3.bf16.xpose.msra.mxu0 %v479_v3  ;;  %v488_v13 = vpack.c.bf16 %v222_v12, %v221_v11  ;;  %v224_v15 = vld [vmem:[%s824_s5 + $0x48] sm:$0xff]  ;;  %v225_v17 = vld [vmem:[%s824_s5 + $0x50] sm:$0xff]  ;;  %v226_v18 = vld [vmem:[%s824_s5 + $0x58] sm:$0xff]  ;;  %s208_s6 = scalar_lea.vmem [#allocation7], %s419_s27  ;;  %s858_s17 = scalar_lea.hbm %s904_s3, %s422_s28 }
  0x5d   : > { %481 = vmatprep.subr.bf16.mxu0 %v677_v2  ;;  %v491_v16 = vpack.c.bf16 %v224_v15, %v223_v14  ;;  %v494_v19 = vpack.c.bf16 %v226_v18, %v225_v17  ;;  %v227_v20 = vld [vmem:[%s824_s5 + $0x60] sm:$0xff]  ;;  %v228_v21 = vld [vmem:[%s824_s5 + $0x68] sm:$0xff]  ;;  %v229_v23 = vld [vmem:[%s824_s5 + $0x70] sm:$0xff]  ;;  %s323_s7 = sshll.u32 %s208_s6, 4  ;;  %s310_s19 = scalar_lea.sflag [#allocation4], %s820_s29  ;;  %s860_s7 = int_to_ptr.vmem [resolvable:$true] %s323_s7 }
  0x5e   : > { %v497_v22 = vpack.c.bf16 %v228_v21, %v227_v20  ;;  %v230_v24 = vld [vmem:[%s824_s5 + $0x78] sm:$0xff]  ;;  %v214_v26 = vld [vmem:[%s902_s1] sm:$0x3]  ;;  %s601_s16 = scalar_lea.vmem %s860_s7, 32  ;;  %p913_p13 = scmp.ne.s32.totalorder %s909_s24, 0 }
  0x5f   : > { %v500_v25 = vpack.c.bf16 %v230_v24, %v229_v23  ;;  %p602_p4 = scmp.ne.s32.totalorder %s860_s7, %s601_s16  ;;  %s680_s20 = smov [#allocation7]  }
  0x60   : > { %v302_v27 = vstv %s301_s9  ;;  %v306_v28 = vstv %s420_s11  ;;  %s605_s22 = sshll.u32 %s680_s20, 4  ;;  %s606_s22 = int_to_ptr.vmem [resolvable:$false] %s605_s22 }
  0x61   : > { %p603_p5 = pnand %p602_p4, %p913_p13  ;;  %s607_s30 = scalar_lea.vmem %s606_s22, 64 }
  0x62   : > { %p608_p8 = scmp.lt.s32.totalorder %s860_s7, %s606_s22  ;;  %p609_p9 = scmp.lt.s32.totalorder %s607_s30, %s601_s16 }
  0x63   : > { %p604_p7 = pneg %p603_p5 }
  0x64   : > { %483 = vmatpush3.bf16.xpose.msra.mxu0 %v482_v7  ;;  %p610_p10 = por %p609_p9, %p608_p8 }
  0x65   : > { %484 = vmatprep.subr.bf16.mxu0 %v677_v2 }
  0x66   : > { %p611_p1 = pnand %p610_p10, %p604_p7 }
  0x6c   : > { %486 = vmatpush3.bf16.xpose.msra.mxu0 %v485_v10 }
  0x6d   : > { %487 = vmatprep.subr.bf16.mxu0 %v677_v2 }
  0x74   : > { %489 = vmatpush3.bf16.xpose.msra.mxu0 %v488_v13 }
  0x75   : > { %490 = vmatprep.subr.bf16.mxu0 %v677_v2 }
  0x7c   : > { %492 = vmatpush3.bf16.xpose.msra.mxu0 %v491_v16 }
  0x7d   : > { %493 = vmatprep.subr.bf16.mxu0 %v677_v2 }
  0x84   : > { %495 = vmatpush3.bf16.xpose.msra.mxu0 %v494_v19 }
  0x85   : > { %496 = vmatprep.subr.bf16.mxu0 %v677_v2 }
  0x8c   : > { %498 = vmatpush3.bf16.xpose.msra.mxu0 %v497_v22 }
  0x8d   : > { %499 = vmatprep.subr.bf16.mxu0 %v677_v2 }
  0x94   : > { %501 = vmatpush3.bf16.xpose.msra.mxu0 %v500_v25 }
  0x9b   : > { %476 = vmatmul.mubr.f32.vlgmr.msra.gmra.mrb[0].mxu0 %v214_v26 }
 0x16e   : > { %v297_v29 = vpop.f32.mrb[0].mxu0 }
 0x16f   : > { %v303_v30 = vadd.f32 %v302_v27, %v297_v29  ;;  %v307_v31 = vadd.f32 %v306_v28, %v297_v29  ;;  %v477_v32 = vpop.f32.mrb[1].mxu0 }
 0x171   : > { %304 = vst [vmem:[%s208_s6] sm:$0x1] %v303_v30  ;;  %308 = vst [vmem:[%s208_s6] sm:$0x2] %v307_v31 }
 0x172   : > { %614 = shalt.err (!%p611_p1)
}
 0x173   : > { %s615_s29 = scalar_lea.hbm %s858_s17, 32  ;;  %s619_s23 = scalar_lea.hbm %s904_s3, 160 }
 0x174   : > { %p616_p6 = scmp.ne.s32.totalorder %s858_s17, %s615_s29  ;;  %p620_p2 = scmp.lt.u32.totalorder %s858_s17, %s904_s3 }
 0x175   : > { %p621_p3 = scmp.lt.u32.totalorder %s619_s23, %s615_s29  ;;  %p623_p4 = scmp.lt.u32.totalorder %s615_s29, %s858_s17 }
 0x176   : > { %p617_p11 = pnand %p616_p6, %p913_p13 }
 0x177   : > { %p622_p12 = por %p621_p3, %p620_p2 }
 0x178   : > { %p618_p0 = pneg %p617_p11 }
 0x179   : > { %p624_p5 = por %p623_p4, %p622_p12 }
 0x17b   : > { %p625_p7 = pnand %p624_p5, %p618_p0 }
 0x17d   : > { %628 = shalt.err (!%p625_p7)
}
 0x17e   : > { %507 = dma.vmem_to_hbm [thread:$0]  (%p913_p13), %s860_s7, 32, %s858_s17, %s310_s19  }
 0x17f PF: > { %p519_p8 = scmp.ge.s32.totalorder %s671_s15, 2  ;;  %s335_s11 = sand.u32 1, %s659_s12  }
 0x180   : > { %p914_p9 = scmp.ne.s32.totalorder %s910_s25, 0  ;;  %s336_s27 = scalar_lea.sflag [#allocation4], %s335_s11 }
 0x182   : > { %p514_p10 = pnand %p519_p8, %p914_p9 }
 0x184   : > { %654 = dma.done.wait (!%p514_p10), %s336_s27, 32  }
 0x185   : > { %656 = vsyncadd (!%p514_p10), %s336_s27, 4294967264  ;;  %p17_p1 = scmp.ge.s32.totalorder %s726_s18, 7   ;;  %s915_s12 = smov %s663_s13 }
 0x186   : > { %s916_s13 = smov %s667_s14  ;;  %s917_s14 = smov %s738_s21 }
 0x187   : > { %s918_s15 = smov %s726_s18  ;;  %19 = sbr.rel (!%p17_p1) target bundleno = 6 (0x6), region = 82 }
 0x18e   :  { %341 = vsyncpa [#allocation3], 1 }
 0x18f   :  { %343 = vsyncpa [#allocation3 + $0x1], 1 }
 0x190   :  { %344 = vsyncpa [#allocation4], 1 }
 0x191   :  { %346 = vsyncpa [#allocation4 + $0x1], 1 }
 0x192   :  { %347 = vsyncpa [#allocation5], 1 }
 0x193   :  { %349 = vsyncpa [#allocation5 + $0x1], 1 }

</bundles_post_ra>
